<compile_context>
chip_gen: v6e
topology: v6e:2x2x1
jax: 0.10.0
libtpu: 0.0.40
codegen_flags: <defaults>
</compile_context>

<pallas_src>
import math

import jax
import jax.numpy as jnp
from jax.experimental import pallas as pl
from jax.experimental.pallas import tpu as pltpu


# ----------------------------------------------------------------------------
# Tile selection helpers
# ----------------------------------------------------------------------------
def _pick_tb(B, bf16_streams):
    # multiples of 16 for clean bf16 sublane packing; prefer >= 2 B-tiles so
    # the "parallel" grid axis can occupy both TensorCores on v7x.
    cands = (256, 128, 64, 32, 16) if bf16_streams else (256, 128, 64, 32, 16, 8)
    divs = [c for c in cands if B % c == 0]
    at_least_two = [c for c in divs if B // c >= 2]
    if at_least_two:
        return at_least_two[0]
    if divs:
        return divs[0]
    return B  # full extent is always a legal block size


def _pick_td(D, tb, itemsize, budget_bytes=24 << 20):
    # 3 streams x 2 pipeline buffers x tb x td x itemsize must fit the budget.
    cands = (8192, 4096, 2048, 1024, 512, 256, 128)
    fitting = [c for c in cands if 3 * 2 * tb * c * itemsize <= budget_bytes]
    if not fitting:
        fitting = [128]
    for c in fitting:                      # prefer exact division (no masking)
        if c <= D and D % c == 0:
            return c
    if D <= fitting[0]:                    # small D: single full-extent block
        return D
    return fitting[0]                      # partial last block -> in-kernel mask


# ----------------------------------------------------------------------------
# Wrapper: builds the Pallas kernel (closure over static D / tiling choices)
# ----------------------------------------------------------------------------
def variational_inference(x, px_mean, px_stddev, qz_mu, qz_sigma, beta=1.0,
                          *, tb=None, td=None, stream_dtype=None):
    """Pallas equivalent of VariationalInference.forward (given model outputs).

    x, px_mean, px_stddev: (B, C, H, W) float32 or bfloat16
    qz_mu, qz_sigma:       (B, Z)
    stream_dtype: optional dtype (e.g. jnp.bfloat16) to cast the three big
                  streams to before the kernel (HBM-bandwidth saver); math is
                  always f32 inside the kernel.
    Returns (loss, diagnostics), diagnostics = {'elbo','log_px','kl'}, each (B,).
    """
    B = x.shape[0]
    D = 1
    for s in x.shape[1:]:
        D *= int(s)
    Z = qz_mu.shape[1]

    x2 = x.reshape(B, D)
    pxm2 = px_mean.reshape(B, D)
    pxs2 = px_stddev.reshape(B, D)
    if stream_dtype is not None:
        x2 = x2.astype(stream_dtype)
        pxm2 = pxm2.astype(stream_dtype)
        pxs2 = pxs2.astype(stream_dtype)

    stream_itemsize = jnp.dtype(x2.dtype).itemsize
    bf16_streams = stream_itemsize < 4

    if tb is None:
        tb = _pick_tb(B, bf16_streams)
    if td is None:
        td = _pick_td(D, tb, stream_itemsize)
    assert B % tb == 0, (B, tb)

    grid = (B // tb, pl.cdiv(D, td))
    needs_mask = (D % td) != 0            # last D block is partial -> mask it

    # SMEM scalars: [beta, 0.5*log(2*pi)*D]  (true D, even if last tile padded)
    params = jnp.array([beta, 0.5 * math.log(2.0 * math.pi) * D],
                       dtype=jnp.float32)

    def kernel(params_ref, x_ref, pxm_ref, pxs_ref, qmu_ref, qsig_ref,
               elbo_ref, logpx_ref, kl_ref, lane_acc_ref):
        k = pl.program_id(1)
        nk = pl.num_programs(1)

        # ---- per-B-tile init ------------------------------------------------
        @pl.when(k == 0)
        def _():
            lane_acc_ref[...] = jnp.zeros_like(lane_acc_ref)

        # ---- streamed (tb, td) tile: Gaussian log-likelihood contribution ---
        xv = x_ref[...].astype(jnp.float32)
        mu = pxm_ref[...].astype(jnp.float32)
        std = pxs_ref[...].astype(jnp.float32)

        diff = mu - xv
        var = std * std
        inv_var = pl.reciprocal(var, approx=True)          # EUP slot, ~free
        # accumulate t = (mu-x)^2/var + 2*log(std); the -0.5 scale and the
        # 0.5*log(2*pi)*D constant are applied once in the finalize.
        t = diff * diff * inv_var + 2.0 * jnp.log(std)

        if needs_mask:
            col = jax.lax.broadcasted_iota(jnp.int32, t.shape, 1) + k * td
            t = jnp.where(col < D, t, 0.0)

        # Fold td lanes down to 128 with per-lane VPU adds only (no XLU work,
        # no narrow stores, in the hot loop).
        n_full = td // 128
        if n_full > 0 and td % 128 == 0:
            s = t[:, 0:128]
            for c in range(1, n_full):
                s = s + t[:, c * 128:(c + 1) * 128]
            lane_acc_ref[...] += s
        else:
            # rare fallback (td not a multiple of 128, e.g. tiny/odd D)
            lane_acc_ref[:, 0:1] += jnp.sum(t, axis=1, keepdims=True)

        # ---- finalize on the last D step ------------------------------------
        @pl.when(k == nk - 1)
        def _():
            beta_v = params_ref[0]
            log2pi_term = params_ref[1]
            # single cross-lane reduce per B-tile
            row_sum = jnp.sum(lane_acc_ref[...], axis=1, keepdims=True)
            log_px = -0.5 * row_sum - log2pi_term           # (tb, 1)

            qmu = qmu_ref[...].astype(jnp.float32)          # (tb, Z), resident
            qsig = qsig_ref[...].astype(jnp.float32)
            qsig2 = qsig * qsig
            kl = -jnp.sum(0.5 * (1.0 + jnp.log(qsig2) - qmu * qmu - qsig2),
                          axis=1, keepdims=True)            # (tb, 1)

            logpx_ref[...] = log_px
            kl_ref[...] = kl
            elbo_ref[...] = log_px - beta_v * kl
        # NOTE: sigma_sqr = mean((mu-x)^2) is computed in the PyTorch module
        # but never used or returned, so it is intentionally omitted.

    bd_spec = pl.BlockSpec((tb, td), lambda i, k: (i, k))   # streamed tiles
    bz_spec = pl.BlockSpec((tb, Z), lambda i, k: (i, 0))    # resident over k
    col_spec = pl.BlockSpec((tb, 1), lambda i, k: (i, 0))   # resident over k

    stream_bytes = 3 * 2 * tb * td * stream_itemsize
    vmem_limit = int(min(48 << 20, max(32 << 20, stream_bytes + (8 << 20))))

    out_shapes = (
        jax.ShapeDtypeStruct((B, 1), jnp.float32),   # elbo
        jax.ShapeDtypeStruct((B, 1), jnp.float32),   # log_px
        jax.ShapeDtypeStruct((B, 1), jnp.float32),   # kl
    )

    elbo, log_px, kl = pl.pallas_call(
        kernel,
        out_shape=out_shapes,
        grid_spec=pltpu.PrefetchScalarGridSpec(
            num_scalar_prefetch=0,
            grid=grid,
            in_specs=[
                pl.BlockSpec(memory_space=pltpu.MemorySpace.SMEM),  # beta/const
                bd_spec, bd_spec, bd_spec,                          # x, mu, std
                bz_spec, bz_spec,                                   # qz mu/sigma
            ],
            out_specs=(col_spec, col_spec, col_spec),
            scratch_shapes=[pltpu.VMEM((tb, 128), jnp.float32)],    # lane acc
        ),
        compiler_params=pltpu.CompilerParams(
            dimension_semantics=("parallel", "arbitrary"),
            vmem_limit_bytes=vmem_limit,
        ),
    )(params, x2, pxm2, pxs2, qz_mu, qz_sigma)

    # Tiny final reduce done in the wrapper (keeps the B axis parallel
    # in-kernel, avoids a masked (1,1) store).
    loss = -jnp.mean(elbo)
    diagnostics = {
        'elbo': elbo.reshape(B),
        'log_px': log_px.reshape(B),
        'kl': kl.reshape(B),
    }
    return loss, diagnostics


# ----------------------------------------------------------------------------
# Tiny deterministic "model" (plain-JAX glue) producing what the original
# forward expects: px (Normal mean/stddev), qz (mu/sigma), z.
# TODO(synk): the generic `model(x)` nn.Module call has no Pallas equivalent;
# it is emulated here with a small deterministic linear VAE.
# ----------------------------------------------------------------------------
def fake_vae_outputs(x, key, latent_dim=32):
    B, C, H, W = x.shape
    D = C * H * W
    k_enc, k_dec, k_eps = jax.random.split(key, 3)

    xf = x.reshape(B, D)
    w_enc = jax.random.normal(k_enc, (D, 2 * latent_dim), jnp.float32) * (1.0 / math.sqrt(D))
    enc = xf @ w_enc
    qz_mu = enc[:, :latent_dim]
    qz_sigma = jax.nn.softplus(enc[:, latent_dim:]) + 1e-3

    eps = jax.random.normal(k_eps, qz_mu.shape, jnp.float32)
    z = qz_mu + qz_sigma * eps

    w_dec = jax.random.normal(k_dec, (latent_dim, 2 * D), jnp.float32) * (1.0 / math.sqrt(latent_dim))
    dec = z @ w_dec
    px_mean = dec[:, :D].reshape(B, C, H, W)
    px_stddev = (jax.nn.softplus(dec[:, D:]) + 1e-3).reshape(B, C, H, W)

    return {'px_mean': px_mean, 'px_stddev': px_stddev,
            'qz_mu': qz_mu, 'qz_sigma': qz_sigma, 'z': z}


# ----------------------------------------------------------------------------
# Pure-JAX reference (mirrors the PyTorch math) for the correctness check.
# ----------------------------------------------------------------------------
def reference(x, px_mean, px_stddev, qz_mu, qz_sigma, beta=1.0):
    diff2 = (px_mean - x) ** 2
    log_px_all = (-diff2 / (2 * px_stddev ** 2)
                  - jnp.log(px_stddev) - 0.5 * math.log(2 * math.pi))
    log_px = log_px_all.sum(axis=(1, 2, 3))
    s2 = qz_sigma ** 2
    kl = -(0.5 * (1 + jnp.log(s2) - qz_mu ** 2 - s2)).sum(axis=1)
    elbo = log_px - beta * kl
    return -elbo.mean(), elbo, log_px, kl


if __name__ == "__main__":
    key = jax.random.PRNGKey(0)
    k_x, k_model = jax.random.split(key)

    B, C, H, W, Z = 2, 4, 16, 16, 32            # D = 1024
    x = jax.random.normal(k_x, (B, C, H, W), jnp.float32)
    o = fake_vae_outputs(x, k_model, latent_dim=Z)

    # ---- f32 streams, td=256 -> 4 D steps so the accumulator / pl.when paths
    # ---- and the deferred lane-fold are exercised --------------------------
    loss, diag = variational_inference(
        x, o['px_mean'], o['px_stddev'], o['qz_mu'], o['qz_sigma'],
        beta=1.0, td=256)
    jax.block_until_ready(loss)
    jax.block_until_ready(diag)

    ref_loss, ref_elbo, ref_logpx, ref_kl = reference(
        x, o['px_mean'], o['px_stddev'], o['qz_mu'], o['qz_sigma'], beta=1.0)
    # log_px / elbo / loss use the EUP approximate reciprocal -> slightly
    # looser tolerance; kl has no approximation -> tight tolerance.
    assert jnp.allclose(loss, ref_loss, rtol=5e-3, atol=5e-2), (loss, ref_loss)
    assert jnp.allclose(diag['elbo'], ref_elbo, rtol=5e-3, atol=5e-2)
    assert jnp.allclose(diag['log_px'], ref_logpx, rtol=5e-3, atol=5e-2)
    assert jnp.allclose(diag['kl'], ref_kl, rtol=1e-4, atol=1e-3)

    # ---- bf16-streamed run (the big HBM-bandwidth optimization) ------------
    # Compared against a reference evaluated on the same bf16-quantized
    # streams, so only in-kernel approximations contribute to the delta.
    loss_bf, diag_bf = variational_inference(
        x, o['px_mean'], o['px_stddev'], o['qz_mu'], o['qz_sigma'],
        beta=1.0, td=256, stream_dtype=jnp.bfloat16)
    jax.block_until_ready(loss_bf)

    xb = x.astype(jnp.bfloat16).astype(jnp.float32)
    mb = o['px_mean'].astype(jnp.bfloat16).astype(jnp.float32)
    sb = o['px_stddev'].astype(jnp.bfloat16).astype(jnp.float32)
    rb_loss, rb_elbo, rb_logpx, rb_kl = reference(
        xb, mb, sb, o['qz_mu'], o['qz_sigma'], beta=1.0)
    assert jnp.allclose(loss_bf, rb_loss, rtol=2e-2, atol=5e-1)
    assert jnp.allclose(diag_bf['elbo'], rb_elbo, rtol=2e-2, atol=5e-1)
    assert jnp.allclose(diag_bf['log_px'], rb_logpx, rtol=2e-2, atol=5e-1)
    assert jnp.allclose(diag_bf['kl'], rb_kl, rtol=1e-4, atol=1e-3)

    print("KERNEL_OK")
</pallas_src>

<mosaic_0001>
module attributes {stable_mosaic.version = 11 : i64} {
  func.func @kernel(%arg0: i32, %arg1: i32, %arg2: memref<2xf32, #tpu.memory_space<smem>>, %arg3: memref<2x256xf32, #tpu.memory_space<vmem>>, %arg4: memref<2x256xf32, #tpu.memory_space<vmem>>, %arg5: memref<2x256xf32, #tpu.memory_space<vmem>>, %arg6: memref<2x32xf32, #tpu.memory_space<vmem>>, %arg7: memref<2x32xf32, #tpu.memory_space<vmem>>, %arg8: memref<2x1xf32, #tpu.memory_space<vmem>>, %arg9: memref<2x1xf32, #tpu.memory_space<vmem>>, %arg10: memref<2x1xf32, #tpu.memory_space<vmem>>, %arg11: memref<2x128xf32, #tpu.memory_space<vmem>>) attributes {dimension_semantics = [#tpu.dimension_semantics<parallel>, #tpu.dimension_semantics<arbitrary>], iteration_bounds = array<i64: 1, 4>, scalar_prefetch = 0 : i64, scratch_operands = 1 : i64, tpu.core_type = #tpu.core_type<tc>, window_params = [{transform_indices = @transform_0, window_bounds = array<i64: 2>}, {transform_indices = @transform_1, window_bounds = array<i64: 2, 256>}, {transform_indices = @transform_2, window_bounds = array<i64: 2, 256>}, {transform_indices = @transform_3, window_bounds = array<i64: 2, 256>}, {transform_indices = @transform_4, window_bounds = array<i64: 2, 32>}, {transform_indices = @transform_5, window_bounds = array<i64: 2, 32>}, {transform_indices = @transform_6, window_bounds = array<i64: 2, 1>}, {transform_indices = @transform_7, window_bounds = array<i64: 2, 1>}, {transform_indices = @transform_8, window_bounds = array<i64: 2, 1>}]} {
    %c0_i32 = arith.constant 0 : i32
    %0 = arith.cmpi eq, %arg1, %c0_i32 : i32
    %1 = arith.extui %0 : i1 to i32
    %c0_i32_0 = arith.constant 0 : i32
    %2 = arith.cmpi ne, %1, %c0_i32_0 : i32
    scf.if %2 {
      %cst_11 = arith.constant 0.000000e+00 : f32
      %24 = vector.broadcast %cst_11 : f32 to vector<2x128xf32>
      %c0_12 = arith.constant 0 : index
      %c0_13 = arith.constant 0 : index
      %25 = vector.load %arg11[%c0_12, %c0_13] : memref<2x128xf32, #tpu.memory_space<vmem>>, vector<2x128xf32>
      tpu.vector_store %arg11[%c0_12, %c0_13], %24 {strides = array<i32>} : memref<2x128xf32, #tpu.memory_space<vmem>>, vector<2x128xf32>,
    } else {
    }
    %c0 = arith.constant 0 : index
    %c0_1 = arith.constant 0 : index
    %3 = vector.load %arg3[%c0, %c0_1] : memref<2x256xf32, #tpu.memory_space<vmem>>, vector<2x256xf32>
    %c0_2 = arith.constant 0 : index
    %c0_3 = arith.constant 0 : index
    %4 = vector.load %arg4[%c0_2, %c0_3] : memref<2x256xf32, #tpu.memory_space<vmem>>, vector<2x256xf32>
    %c0_4 = arith.constant 0 : index
    %c0_5 = arith.constant 0 : index
    %5 = vector.load %arg5[%c0_4, %c0_5] : memref<2x256xf32, #tpu.memory_space<vmem>>, vector<2x256xf32>
    %6 = arith.subf %4, %3 : vector<2x256xf32>
    %7 = arith.mulf %5, %5 : vector<2x256xf32>
    %8 = tpu.reciprocal %7 {approx = true} : vector<2x256xf32> -> vector<2x256xf32>
    %9 = arith.mulf %6, %6 : vector<2x256xf32>
    %10 = arith.mulf %9, %8 : vector<2x256xf32>
    %11 = math.log %5 : vector<2x256xf32>
    %cst = arith.constant 2.000000e+00 : f32
    %12 = vector.broadcast %cst : f32 to vector<2x256xf32>
    %13 = arith.mulf %12, %11 : vector<2x256xf32>
    %14 = arith.addf %10, %13 : vector<2x256xf32>
    %15 = vector.extract_strided_slice %14 {offsets = [0, 0], sizes = [2, 128], strides = [1, 1]} : vector<2x256xf32> to vector<2x128xf32>
    %16 = vector.extract_strided_slice %14 {offsets = [0, 128], sizes = [2, 128], strides = [1, 1]} : vector<2x256xf32> to vector<2x128xf32>
    %17 = arith.addf %15, %16 : vector<2x128xf32>
    %c0_6 = arith.constant 0 : index
    %c0_7 = arith.constant 0 : index
    %18 = vector.load %arg11[%c0_6, %c0_7] : memref<2x128xf32, #tpu.memory_space<vmem>>, vector<2x128xf32>
    %19 = arith.addf %18, %17 : vector<2x128xf32>
    %c0_8 = arith.constant 0 : index
    %c0_9 = arith.constant 0 : index
    %20 = vector.load %arg11[%c0_8, %c0_9] : memref<2x128xf32, #tpu.memory_space<vmem>>, vector<2x128xf32>
    tpu.vector_store %arg11[%c0_8, %c0_9], %19 {strides = array<i32>} : memref<2x128xf32, #tpu.memory_space<vmem>>, vector<2x128xf32>,
    %c3_i32 = arith.constant 3 : i32
    %21 = arith.cmpi eq, %arg1, %c3_i32 : i32
    %22 = arith.extui %21 : i1 to i32
    %c0_i32_10 = arith.constant 0 : i32
    %23 = arith.cmpi ne, %22, %c0_i32_10 : i32
    scf.if %23 {
      %c0_11 = arith.constant 0 : index
      %24 = memref.load %arg2[%c0_11] : memref<2xf32, #tpu.memory_space<smem>>
      %c1 = arith.constant 1 : index
      %25 = memref.load %arg2[%c1] : memref<2xf32, #tpu.memory_space<smem>>
      %c0_12 = arith.constant 0 : index
      %c0_13 = arith.constant 0 : index
      %26 = vector.load %arg11[%c0_12, %c0_13] : memref<2x128xf32, #tpu.memory_space<vmem>>, vector<2x128xf32>
      %cst_14 = arith.constant dense<0.000000e+00> : vector<2xf32>
      %27 = vector.multi_reduction <add>, %26, %cst_14 [1] : vector<2x128xf32> to vector<2xf32>
      %28 = vector.shape_cast %27 : vector<2xf32> to vector<2x1xf32>
      %cst_15 = arith.constant -5.000000e-01 : f32
      %29 = vector.broadcast %cst_15 : f32 to vector<2x1xf32>
      %30 = arith.mulf %29, %28 : vector<2x1xf32>
      %31 = vector.broadcast %25 : f32 to vector<2x1xf32>
      %32 = arith.subf %30, %31 : vector<2x1xf32>
      %c0_16 = arith.constant 0 : index
      %c0_17 = arith.constant 0 : index
      %33 = vector.load %arg6[%c0_16, %c0_17] : memref<2x32xf32, #tpu.memory_space<vmem>>, vector<2x32xf32>
      %c0_18 = arith.constant 0 : index
      %c0_19 = arith.constant 0 : index
      %34 = vector.load %arg7[%c0_18, %c0_19] : memref<2x32xf32, #tpu.memory_space<vmem>>, vector<2x32xf32>
      %35 = arith.mulf %34, %34 : vector<2x32xf32>
      %36 = math.log %35 : vector<2x32xf32>
      %cst_20 = arith.constant 1.000000e+00 : f32
      %37 = vector.broadcast %cst_20 : f32 to vector<2x32xf32>
      %38 = arith.addf %37, %36 : vector<2x32xf32>
      %39 = arith.mulf %33, %33 : vector<2x32xf32>
      %40 = arith.subf %38, %39 : vector<2x32xf32>
      %41 = arith.subf %40, %35 : vector<2x32xf32>
      %cst_21 = arith.constant 5.000000e-01 : f32
      %42 = vector.broadcast %cst_21 : f32 to vector<2x32xf32>
      %43 = arith.mulf %42, %41 : vector<2x32xf32>
      %cst_22 = arith.constant dense<0.000000e+00> : vector<2xf32>
      %44 = vector.multi_reduction <add>, %43, %cst_22 [1] : vector<2x32xf32> to vector<2xf32>
      %45 = vector.shape_cast %44 : vector<2xf32> to vector<2x1xf32>
      %cst_23 = arith.constant 0.000000e+00 : f32
      %46 = vector.broadcast %cst_23 : f32 to vector<2x1xf32>
      %47 = arith.subf %46, %45 : vector<2x1xf32>
      %c0_24 = arith.constant 0 : index
      %c0_25 = arith.constant 0 : index
      %48 = vector.load %arg9[%c0_24, %c0_25] : memref<2x1xf32, #tpu.memory_space<vmem>>, vector<2x1xf32>
      tpu.vector_store %arg9[%c0_24, %c0_25], %32 {strides = array<i32>} : memref<2x1xf32, #tpu.memory_space<vmem>>, vector<2x1xf32>,
      %c0_26 = arith.constant 0 : index
      %c0_27 = arith.constant 0 : index
      %49 = vector.load %arg10[%c0_26, %c0_27] : memref<2x1xf32, #tpu.memory_space<vmem>>, vector<2x1xf32>
      tpu.vector_store %arg10[%c0_26, %c0_27], %47 {strides = array<i32>} : memref<2x1xf32, #tpu.memory_space<vmem>>, vector<2x1xf32>,
      %50 = vector.broadcast %24 : f32 to vector<2x1xf32>
      %51 = arith.mulf %50, %47 : vector<2x1xf32>
      %52 = arith.subf %32, %51 : vector<2x1xf32>
      %c0_28 = arith.constant 0 : index
      %c0_29 = arith.constant 0 : index
      %53 = vector.load %arg8[%c0_28, %c0_29] : memref<2x1xf32, #tpu.memory_space<vmem>>, vector<2x1xf32>
      tpu.vector_store %arg8[%c0_28, %c0_29], %52 {strides = array<i32>} : memref<2x1xf32, #tpu.memory_space<vmem>>, vector<2x1xf32>,
    } else {
    }
    return
  }
  func.func @transform_0(%arg0: i32, %arg1: i32) -> i32 {
    %c0_i32 = arith.constant 0 : i32
    %c0_i32_0 = arith.constant 0 : i32
    return %c0_i32 : i32
  }
  func.func @transform_1(%arg0: i32, %arg1: i32) -> (i32, i32) {
    %c0_i32 = arith.constant 0 : i32
    return %arg0, %arg1 : i32, i32
  }
  func.func @transform_2(%arg0: i32, %arg1: i32) -> (i32, i32) {
    %c0_i32 = arith.constant 0 : i32
    return %arg0, %arg1 : i32, i32
  }
  func.func @transform_3(%arg0: i32, %arg1: i32) -> (i32, i32) {
    %c0_i32 = arith.constant 0 : i32
    return %arg0, %arg1 : i32, i32
  }
  func.func @transform_4(%arg0: i32, %arg1: i32) -> (i32, i32) {
    %c0_i32 = arith.constant 0 : i32
    %c0_i32_0 = arith.constant 0 : i32
    return %arg0, %c0_i32 : i32, i32
  }
  func.func @transform_5(%arg0: i32, %arg1: i32) -> (i32, i32) {
    %c0_i32 = arith.constant 0 : i32
    %c0_i32_0 = arith.constant 0 : i32
    return %arg0, %c0_i32 : i32, i32
  }
  func.func @transform_6(%arg0: i32, %arg1: i32) -> (i32, i32) {
    %c0_i32 = arith.constant 0 : i32
    %c0_i32_0 = arith.constant 0 : i32
    return %arg0, %c0_i32 : i32, i32
  }
  func.func @transform_7(%arg0: i32, %arg1: i32) -> (i32, i32) {
    %c0_i32 = arith.constant 0 : i32
    %c0_i32_0 = arith.constant 0 : i32
    return %arg0, %c0_i32 : i32, i32
  }
  func.func @transform_8(%arg0: i32, %arg1: i32) -> (i32, i32) {
    %c0_i32 = arith.constant 0 : i32
    %c0_i32_0 = arith.constant 0 : i32
    return %arg0, %c0_i32 : i32, i32
  }
}

</mosaic_0001>

<bundles_post_ra>
// kernel: tpu_custom_call.1
= control target key start
LH: loop header
LB: loop body
LE: loop exit
PB: predicated region body
PF: predicated region fallthrough
CT: control target
= control target key end

     0   :  { %s1268_s0 = inlined_call_operand.hbm [shape: f32[2], index: 0, kind: input, shape index: {}]   ;;  %s1269_s1 = inlined_call_operand.hbm [shape: f32[2,1024], index: 1, kind: input, shape index: {}]   ;;  %s1270_s2 = inlined_call_operand.hbm [shape: f32[2,1024], index: 2, kind: input, shape index: {}]   ;;  %s1271_s3 = inlined_call_operand.hbm [shape: f32[2,1024], index: 3, kind: input, shape index: {}]   ;;  %s1272_s4 = inlined_call_operand.vmem [shape: f32[2,32], index: 4, kind: input, shape index: {}]   ;;  %s1273_s5 = inlined_call_operand.vmem [shape: f32[2,32], index: 5, kind: input, shape index: {}]   ;;  %s1274_s6 = inlined_call_operand.vmem [shape: f32[2,1], index: 6, kind: output, shape index: {0}]   ;;  %s1275_s7 = inlined_call_operand.vmem [shape: f32[2,1], index: 7, kind: output, shape index: {1}]   ;;  %s1276_s8 = inlined_call_operand.vmem [shape: f32[2,1], index: 8, kind: output, shape index: {2}]  }
   0x1   :  { %1281 = sst [smem:[#allocation16_spill]] %s1269_s1 }
   0x2   :  { %1282 = sst [smem:[#allocation17_spill]] %s1270_s2 }
   0x3   :  { %14 = vsyncpa [#allocation5], 0 }
   0x4   :  { %15 = vsyncpa [#allocation4], 0 }
   0x5   :  { %17 = vsyncpa [#allocation4 + $0x1], 0 }
   0x6   :  { %18 = vsyncpa [#allocation8], 0 }
   0x7   :  { %20 = vsyncpa [#allocation8 + $0x1], 0  ;;  %s1088_s27 = smov 0   ;;  %s1090_s28 = smov 0  }
   0x8   :  { %s1092_s29 = smov 0   ;;  %s1094_s30 = smov 0  }
   0x9   :  { %s1096_s9 = smov 0   ;;  %s1098_s10 = smov 0  }
   0xa LB: > { %1283 = sst [smem:[#allocation13_spill]] %s1032_s9  ;;  %s35_s11 = sadd.s32 1, %s1032_s9  ;;  %s1036_s10 = sphi %s1098_s10, %s26_s10   ;;  %s1032_s9 = sphi %s1096_s9, %s1297_s9   ;;  %s1028_s30 = sphi %s1094_s30, %s1296_s30   ;;  %s1024_s29 = sphi %s1092_s29, %s1300_s29   ;;  %s1020_s28 = sphi %s1090_s28, %s1299_s28   ;;  %s1016_s27 = sphi %s1088_s27, %s1298_s27  }
   0xb   : > { %s68_s12 = sadd.s32 1, %s1024_s29  ;;  %p36_p0 = scmp.ge.s32.totalorder %s35_s11, 4 }
   0xc   : > { %p75_p1 = scmp.ne.s32.totalorder %s1024_s29, %s1020_s28  ;;  %p76_p2 = scmp.eq.s32.totalorder %s1036_s10, 0 }
   0xd   : > { %s1302_s11 = smov (%p36_p0, %s35_s11), 0  ;;  %p825_p4 = scmp.lt.s32.totalorder %s1036_s10, 4 }
   0xe   : > { %1284 = sst [smem:[#allocation14_spill]] %s1302_s11  ;;  %p77_p3 = por %p76_p2, %p75_p1 }
   0xf   : > { %s64_s13 = ssub.s32 %s1032_s9, %s1302_s11  ;;  %s1277_s14 = sand.u32 1, %s1024_s29  }
  0x10   : > { %p66_p5 = scmp.eq.s32.totalorder %s64_s13, 0  ;;  %s1131_s15 = sshll.u32 %s1277_s14, 2 }
  0x11   : > { %s1134_s16 = sshll.u32 %s1032_s9, 6  ;;  %p1136_p6 = pnand %p825_p4, %p77_p3 }
  0x12   : > { %s1141_s18 = scalar_select %p66_p5, %s1024_s29, %s68_s12  }
  0x13   : > { %s335_s19 = sand.u32 1, %s1036_s10   ;;  %s1287_s2 = sld [smem:[#allocation17_spill]] }
  0x14   : > { %1286 = sst [smem:[#allocation15_spill]] %s1141_s18  ;;  %s339_s23 = scalar_lea.vmem [#allocation7], %s1131_s15 }
  0x15   : > { %s349_s24 = sshll.u32 %s339_s23, 4  ;;  %s1149_s25 = scalar_lea.sflag [#allocation8], %s335_s19  ;;  %s350_s24 = int_to_ptr.vmem [resolvable:$true] %s349_s24 }
  0x16   : > { %p885_p7 = pneg %p1136_p6  ;;  %s896_s26 = scalar_lea.vmem %s350_s24, 64 }
  0x17   : > { %p897_p8 = scmp.ne.s32.totalorder %s350_s24, %s896_s26  ;;  %s1038_s12 = smov [#allocation7]  }
  0x18   : > { %s901_s13 = sshll.u32 %s1038_s12, 4  ;;  %s902_s13 = int_to_ptr.vmem [resolvable:$false] %s901_s13 }
  0x19   : > { %s347_s22 = scalar_lea.hbm %s1287_s2, %s1134_s16  ;;  %p899_p9 = pnand %p897_p8, %p885_p7 }
  0x1a   : > { %s903_s14 = scalar_lea.vmem %s902_s13, 128  ;;  %p904_p11 = scmp.lt.s32.totalorder %s350_s24, %s902_s13 }
  0x1b   : > { %p900_p10 = pneg %p899_p9  ;;  %p905_p12 = scmp.lt.s32.totalorder %s903_s14, %s896_s26 }
  0x1d   : > { %p906_p13 = por %p905_p12, %p904_p11 }
  0x1f   : > { %p907_p0 = pnand %p906_p13, %p900_p10 }
  0x21   : > { %910 = shalt.err (!%p907_p0)
}
  0x22   : > { %820 = dma.hbm_to_vmem [thread:$0]  (!%p1136_p6), %s347_s22, 64, %s350_s24, %s1149_s25  }
  0x23   : > { %s1278_s19 = sadd.s32 4294967295, %s1036_s10   ;;  %p81_p1 = scmp.ne.s32.totalorder %s1020_s28, %s1016_s27 }
  0x24   : > { %p1164_p2 = scmp.eq.s32.totalorder %s1278_s19, 0  ;;  %p770_p3 = scmp.ge.s32.totalorder %s1036_s10, 1 }
  0x25   : > { %p278_p4 = scmp.lt.s32.totalorder %s1036_s10, 5  ;;  %s1291_s1 = sld [smem:[#allocation16_spill]] }
  0x26   : > { %p1172_p5 = por %p1164_p2, %p81_p1  ;;  %s318_s24 = scalar_lea.vmem [#allocation6], %s1131_s15 }
  0x27   : > { %p1176_p8 = pnand %p770_p3, %p278_p4  ;;  %s328_s26 = sshll.u32 %s318_s24, 4  ;;  %s329_s26 = int_to_ptr.vmem [resolvable:$true] %s328_s26 }
  0x28   : > { %s1293_s13 = sand.u32 1, %s1024_s29   ;;  %s924_s2 = scalar_lea.vmem %s329_s26, 64 }
  0x29   : > { %p810_p9 = pneg %p1176_p8  ;;  %s315_s19 = scalar_lea.sflag [#allocation4], %s1293_s13 }
  0x2a   : > { %p925_p11 = scmp.ne.s32.totalorder %s329_s26, %s924_s2  ;;  %s1039_s11 = smov [#allocation6]  }
  0x2b   : > { %s326_s23 = scalar_lea.hbm %s1291_s1, %s1134_s16  ;;  %p1189_p10 = pnand %p810_p9, %p1164_p2 }
  0x2c   : > { %p927_p12 = pnand %p925_p11, %p885_p7  ;;  %s929_s9 = sshll.u32 %s1039_s11, 4  ;;  %s930_s9 = int_to_ptr.vmem [resolvable:$false] %s929_s9 }
  0x2d   : > { %s931_s27 = scalar_lea.vmem %s930_s9, 128  ;;  %p932_p0 = scmp.lt.s32.totalorder %s329_s26, %s930_s9 }
  0x2e   : > { %p928_p13 = pneg %p927_p12  ;;  %p933_p1 = scmp.lt.s32.totalorder %s931_s27, %s924_s2 }
  0x30   : > { %p934_p3 = por %p933_p1, %p932_p0 }
  0x32   : > { %p935_p4 = pnand %p934_p3, %p928_p13 }
  0x34   : > { %938 = shalt.err (!%p935_p4)
}
  0x35   : > { %817 = dma.hbm_to_vmem [thread:$0]  (!%p1136_p6), %s326_s23, 64, %s329_s26, %s315_s19  }
  0x36   : > { %s368_s13 = scalar_lea.hbm %s1271_s3, %s1134_s16  ;;  %s1040_s1 = smov [#allocation3]  }
  0x37   : > { %813 = dma.hbm_to_smem (!%p1189_p10), %s1268_s0, 16, %s1040_s1, [#allocation5]  }
  0x38   : > { %s360_s2 = scalar_lea.vmem [#allocation9], %s1131_s15  ;;  %s1041_s19 = smov [#allocation9]  }
  0x39   : > { %s370_s9 = sshll.u32 %s360_s2, 4  ;;  %s968_s23 = sshll.u32 %s1041_s19, 4  ;;  %s371_s9 = int_to_ptr.vmem [resolvable:$true] %s370_s9  ;;  %s969_s23 = int_to_ptr.vmem [resolvable:$false] %s968_s23 }
  0x3a   : > { %s963_s27 = scalar_lea.vmem %s371_s9, 64  ;;  %s970_s26 = scalar_lea.vmem %s969_s23, 128 }
  0x3b   : > { %p964_p9 = scmp.ne.s32.totalorder %s371_s9, %s963_s27  ;;  %p971_p13 = scmp.lt.s32.totalorder %s371_s9, %s969_s23 }
  0x3c   : > { %p972_p0 = scmp.lt.s32.totalorder %s970_s26, %s963_s27 }
  0x3d   : > { %p966_p11 = pnand %p964_p9, %p885_p7 }
  0x3e   : > { %p973_p1 = por %p972_p0, %p971_p13 }
  0x3f   : > { %p967_p12 = pneg %p966_p11 }
  0x41   : > { %p974_p3 = pnand %p973_p1, %p967_p12 }
  0x43   : > { %977 = shalt.err (!%p974_p3)
}
  0x44   : > { %823 = dma.hbm_to_vmem [thread:$0]  (!%p1136_p6), %s368_s13, 64, %s371_s9, %s1149_s25  }
  0x45   : > { %379 = sbr.rel (%p1176_p8) target bundleno = 295 (0x127), region = 44 }
  0x4a   : > { %1003 = dma.done.wait (%p1164_p2), [#allocation5], 16  }
  0x4b   : > { %1005 = vsyncadd (%p1164_p2), [#allocation5], 4294967280  ;;  %s385_s1 = sand.u32 1, %s1020_s28  }
  0x4c   : > { %s786_s15 = sshll.u32 %s385_s1, 2  ;;  %s386_s16 = scalar_lea.sflag [#allocation4], %s385_s1 }
  0x4d   : > { %s389_s18 = scalar_lea.vmem [#allocation6], %s786_s15 }
  0x4e   : > { %1007 = dma.done.wait (%p1172_p5), %s386_s16, 64  }
  0x4f   : > { %1009 = vsyncadd (%p1172_p5), %s386_s16, 4294967232  ;;  %s1294_s17 = sadd.s32 4294967295, %s1036_s10   ;;  %s398_s12 = scalar_lea.vmem [#allocation7], %s786_s15 }
  0x50   : > { %s394_s25 = sand.u32 1, %s1294_s17  }
  0x51   : > { %s395_s21 = scalar_lea.sflag [#allocation8], %s394_s25 }
  0x52   : > { %1011 = dma.done.wait (%p1172_p5), %s395_s21, 128  }
  0x53   : > { %1013 = vsyncadd (%p1172_p5), %s395_s21, 4294967168  ;;  %s407_s14 = scalar_lea.vmem [#allocation9], %s786_s15 }
  0x54   : > { %412 = sfence }
  0x55   : > { %p789_p6 = scmp.ne.s32.totalorder %s1028_s30, 0 }
  0x57   : > { %492 = sbr.rel (%p789_p6) target bundleno = 94 (0x5e), region = 64 }
  0x5c   : > { %v1042_v0 = vmov 0.0  }
  0x5d   : > { %493 = vst [vmem:[#allocation2] sm:$0x3] %v1042_v0 }
  0x5e PF: > { %v496_v1 = vld [vmem:[%s407_s14] sm:$0xf]  ;;  %v494_v3 = vld [vmem:[%s389_s18] sm:$0xf]  ;;  %v495_v4 = vld [vmem:[%s398_s12] sm:$0xf] }
  0x5f   : > { %v498_v2 = vmul.f32 %v496_v1, %v496_v1  ;;  %877 = vlog2.f32 %v496_v1  ;;  %v497_v5 = vsub.f32 %v495_v4, %v494_v3  ;;  %p790_p7 = scmp.ne.s32.totalorder %s1028_s30, 3 }
  0x60   : > { %s791_s30 = sld [smem:[#allocation3 + $0x1]] (!%p790_p7) }
  0x61   : > { %879 = vrcp.f32 %v498_v2  ;;  %v500_v6 = vmul.f32 %v497_v5, %v497_v5  ;;  %s517_s9 = sld [smem:[#allocation3]] (!%p790_p7) }
  0x64   : > { %v510_v14 = vld [vmem:[#allocation2] sm:$0x3] }
  0x6c   : > { %v878_v7 = vpop.eup %877 }
  0x6d   : > { %v503_v8 = vmul.f32 0.6931472, %v878_v7 }
  0x6e   : > { %v880_v9 = vpop.eup %879 }
  0x6f   : > { %v501_v10 = vmul.f32 %v880_v9, %v500_v6  ;;  %v504_v11 = vmul.f32 2.0, %v503_v8 }
  0x71   : > { %v505_v12 = vadd.f32 %v504_v11, %v501_v10 }
  0x73   : > { %v507_v13 = vrot.slane %v505_v12, 2 }
  0x75   : > { %v509_v15 = vadd.f32 %v507_v13, %v505_v12  ;;  %516 = sbr.rel (%p790_p7) target bundleno = 295 (0x127), region = 68 }
  0x77   : > { %v511_v16 = vadd.f32 %v510_v14, %v509_v15 }
  0x79   : > { %512 = vst [vmem:[#allocation2] sm:$0x3] %v511_v16 }
  0x7a   : > { %vm520_vm0 = vcmask 1041408   ;;  %v528_v19 = vld [vmem:[%s1273_s5] sm:$0x3]  ;;  %vm537_vm1 = vcmask 254976   ;;  %v525_v31 = vstv %s791_s30  ;;  %vm542_vm2 = vcmask 1024  }
  0x7b   : > { %v529_v20 = vmul.f32 %v528_v19, %v528_v19  ;;  %v527_v21 = vld [vmem:[%s1272_s4] sm:$0x3]  ;;  %v545_v35 = vstv %s517_s9 }
  0x7c   : > { %v533_v24 = vmul.f32 %v527_v21, %v527_v21 }
  0x7d   : > { %881 = vlog2.f32 %v529_v20 }
  0x80   : > { %v519_v17 = vld [vmem:[#allocation2] sm:$0x3] }
  0x81   : > { %v521_v18 = vsel %vm520_vm0, %v519_v17, 0.0 }
  0x82   : > { %522 = vadd.xlane.f32.xlu0 %v521_v18 }
  0x8a   : > { %v882_v22 = vpop.eup %881 }
  0x8b   : > { %v531_v23 = vmul.f32 0.6931472, %v882_v22 }
  0x8d   : > { %v532_v25 = vadd.f32 1.0, %v531_v23 }
  0x8f   : > { %v534_v26 = vsub.f32 %v532_v25, %v533_v24 }
  0x91   : > { %v535_v27 = vsub.f32 %v534_v26, %v529_v20 }
  0x93   : > { %v536_v28 = vmul.f32 0.5, %v535_v27 }
  0x95   : > { %v538_v29 = vsel %vm537_vm1, %v536_v28, 0.0 }
  0x96   : > { %539 = vadd.xlane.f32.xlu0 %v538_v29 }
 0x10b   : > { %v523_v30 = vpop.xlane.xlu0 %522 }
 0x10c   : > { %v524_v32 = vmul.f32 -0.5, %v523_v30 }
 0x10e   : > { %v526_v33 = vsub.f32 %v524_v32, %v525_v31 }
 0x110   : > { %543 = vst.msk [vmem:[%s1275_s7] sm:$0x3] %vm542_vm2, %v526_v33 }
 0x11f   : > { %v540_v34 = vpop.xlane.xlu0 %539 }
 0x120   : > { %v541_v36 = vsub.f32 0.0, %v540_v34 }
 0x122   : > { %544 = vst.msk [vmem:[%s1276_s8] sm:$0x3] %vm542_vm2, %v541_v36  ;;  %v546_v37 = vmul.f32 %v545_v35, %v541_v36 }
 0x124   : > { %v547_v38 = vsub.f32 %v526_v33, %v546_v37 }
 0x126   : > { %548 = vst.msk [vmem:[%s1274_s6] sm:$0x3] %vm542_vm2, %v547_v38 }
 0x127 PF: > { %s26_s10 = sadd.s32 1, %s1036_s10   ;;  %s1295_s1 = sld [smem:[#allocation15_spill]] }
 0x128   : > { %p23_p2 = scmp.ge.s32.totalorder %s26_s10, 6   ;;  %s1296_s30 = sld [smem:[#allocation13_spill]] }
 0x129   : > { %s1297_s9 = sld [smem:[#allocation14_spill]]  ;;  %s1298_s27 = smov %s1020_s28 }
 0x12a   : > { %s1299_s28 = smov %s1024_s29  ;;  %25 = sbr.rel (!%p23_p2) target bundleno = 10 (0xa), region = 151 }
 0x12d   : > { %s1300_s29 = smov %s1295_s1 }
 0x12f   :  { %596 = vsyncpa [#allocation4], 1 }
 0x130   :  { %598 = vsyncpa [#allocation4 + $0x1], 1 }
 0x131   :  { %599 = vsyncpa [#allocation8], 1 }
 0x132   :  { %601 = vsyncpa [#allocation8 + $0x1], 1 }
 0x133   :  { %602 = vsyncpa [#allocation5], 1 }
 0x134   :  { %604 = vsyncpa [#allocation5 + $0x1], 1 }

</bundles_post_ra>
